<compile_context>
chip_gen: v5e
topology: v5e:2x2
jax: 0.10.0
libtpu: 0.0.40
codegen_flags: <defaults>
</compile_context>

<pallas_src>
import jax
import jax.numpy as jnp
from jax.experimental import pallas as pl
from jax.experimental.pallas import tpu as pltpu


def _mlp_kernel(x_ref, w1_ref, b1_ref, w2_ref, b2_ref, w3_ref, b3_ref, out_ref):
    # x_ref: (F, tb) bf16  -- batch on lanes.
    # Layer 1: bf16 MXU matmul, f32 accumulate; bias (+lane broadcast) + relu on VPU.
    h1 = jnp.dot(w1_ref[...], x_ref[...], preferred_element_type=jnp.float32)
    h1 = jnp.maximum(h1 + b1_ref[...], 0.0)                       # (H1, tb) + (H1, 1)
    # Layer 2: bf16 MXU matmul, f32 accumulate.
    h2 = jnp.dot(w2_ref[...], h1.astype(jnp.bfloat16),
                 preferred_element_type=jnp.float32)
    h2 = jnp.maximum(h2 + b2_ref[...], 0.0)                       # (H2, tb)
    # Layer 3 (out_features == 1): VPU multiply + sublane reduction -> lane-dense row.
    out = jnp.sum(h2 * w3_ref[...], axis=0, keepdims=True) + b3_ref[...]  # (1, tb)
    out_ref[...] = out.astype(out_ref.dtype)


def stock_price_predictor(x, params, tile_b=4096):
    """Forward pass of StockPricePredictor as a fused, batch-tiled Pallas kernel.

    x: [B, input_size] float32
    params: dict with w1 [in,64], b1 [1,64], w2 [64,32], b2 [1,32],
            w3 [32,1], b3 [1,1]   (all float32)
    returns: [B, 1] float32
    """
    B, F = x.shape
    w1, b1 = params["w1"], params["b1"]
    w2, b2 = params["w2"], params["b2"]
    w3, b3 = params["w3"], params["b3"]
    H1, H2 = w1.shape[1], w2.shape[1]

    # Transposed, bf16 input (batch on lanes).  Single XLA pass over x.
    x_t = x.T.astype(jnp.bfloat16)                       # (F, B)
    w1_t = w1.T.astype(jnp.bfloat16)                     # (H1, F)
    w2_t = w2.T.astype(jnp.bfloat16)                     # (H2, H1)
    b1_c = b1.reshape(H1, 1).astype(jnp.float32)
    b2_c = b2.reshape(H2, 1).astype(jnp.float32)
    w3_c = w3.reshape(H2, 1).astype(jnp.float32)         # already a column
    b3_c = b3.reshape(1, 1).astype(jnp.float32)

    # Batch tile: whole batch if small, otherwise tile_b lanes per grid step
    # (multiple of 128) with zero-padding of the batch to a tile multiple.
    if B <= tile_b:
        tb, Bp, x_in = B, B, x_t
    else:
        tb = (tile_b // 128) * 128
        Bp = ((B + tb - 1) // tb) * tb
        x_in = jnp.pad(x_t, ((0, 0), (0, Bp - B))) if Bp != B else x_t
    grid_b = Bp // tb

    const = lambda shape: pl.BlockSpec(shape, lambda i: (0, 0))

    out = pl.pallas_call(
        _mlp_kernel,
        out_shape=jax.ShapeDtypeStruct((1, Bp), jnp.float32),
        grid=(grid_b,),
        in_specs=[
            pl.BlockSpec((F, tb), lambda i: (0, i)),   # streamed batch-column tiles
            const((H1, F)),                            # weights / biases stay resident
            const((H1, 1)),
            const((H2, H1)),
            const((H2, 1)),
            const((H2, 1)),                            # w3 column for mul + reduce
            const((1, 1)),
        ],
        out_specs=pl.BlockSpec((1, tb), lambda i: (0, i)),   # lane-dense output row
        compiler_params=pltpu.CompilerParams(
            dimension_semantics=("parallel",)),
    )(x_in, w1_t, b1_c, w2_t, b2_c, w3_c, b3_c)

    return out[0, :B].reshape(B, 1)


def init_params(key, input_size):
    """Deterministic init matching PyTorch nn.Linear default
    (uniform(-1/sqrt(fan_in), 1/sqrt(fan_in)))."""
    def linear(k, fan_in, fan_out):
        kw, kb = jax.random.split(k)
        bound = 1.0 / jnp.sqrt(jnp.float32(fan_in))
        w = jax.random.uniform(kw, (fan_in, fan_out), jnp.float32, -bound, bound)
        b = jax.random.uniform(kb, (1, fan_out), jnp.float32, -bound, bound)
        return w, b

    k1, k2, k3 = jax.random.split(key, 3)
    w1, b1 = linear(k1, input_size, 64)
    w2, b2 = linear(k2, 64, 32)
    w3, b3 = linear(k3, 32, 1)
    return {"w1": w1, "b1": b1, "w2": w2, "b2": b2, "w3": w3, "b3": b3}


def reference_forward_f32(x, p):
    h1 = jnp.maximum(x @ p["w1"] + p["b1"], 0.0)
    h2 = jnp.maximum(h1 @ p["w2"] + p["b2"], 0.0)
    return h2 @ p["w3"] + p["b3"]


def reference_forward_mixed(x, p):
    # Mirrors the kernel's layout + mixed precision (bf16 matmuls, f32 accumulate).
    x_t = x.T.astype(jnp.bfloat16)
    h1 = jnp.dot(p["w1"].T.astype(jnp.bfloat16), x_t,
                 preferred_element_type=jnp.float32)
    h1 = jnp.maximum(h1 + p["b1"].reshape(-1, 1), 0.0)
    h2 = jnp.dot(p["w2"].T.astype(jnp.bfloat16), h1.astype(jnp.bfloat16),
                 preferred_element_type=jnp.float32)
    h2 = jnp.maximum(h2 + p["b2"].reshape(-1, 1), 0.0)
    out = jnp.sum(h2 * p["w3"].reshape(-1, 1), axis=0, keepdims=True) + p["b3"]
    return out.T


if __name__ == "__main__":
    key = jax.random.PRNGKey(0)
    kx, kp = jax.random.split(key)

    batch, input_size = 8, 16
    x = jax.random.normal(kx, (batch, input_size), jnp.float32)
    params = init_params(kp, input_size)

    # NOTE: at B=8 kernel-launch overhead dominates; the lane-dense transposed layout
    # and bf16 streaming pay off at large batches — this shape is the correctness check.
    out = stock_price_predictor(x, params)
    out = jax.block_until_ready(out)
    assert out.shape == (batch, 1)

    ref_mixed = reference_forward_mixed(x, params)
    ref_f32 = reference_forward_f32(x, params)
    assert jnp.allclose(out, ref_mixed, atol=2e-3, rtol=2e-3)
    assert jnp.allclose(out, ref_f32, atol=5e-2, rtol=5e-2)

    print("KERNEL_OK")
</pallas_src>

<mosaic_0001>
module attributes {stable_mosaic.version = 11 : i64} {
  func.func @_mlp_kernel(%arg0: i32, %arg1: memref<16x8xbf16, #tpu.memory_space<vmem>>, %arg2: memref<64x16xbf16, #tpu.memory_space<vmem>>, %arg3: memref<64x1xf32, #tpu.memory_space<vmem>>, %arg4: memref<32x64xbf16, #tpu.memory_space<vmem>>, %arg5: memref<32x1xf32, #tpu.memory_space<vmem>>, %arg6: memref<32x1xf32, #tpu.memory_space<vmem>>, %arg7: memref<1x1xf32, #tpu.memory_space<vmem>>, %arg8: memref<1x8xf32, #tpu.memory_space<vmem>>) attributes {dimension_semantics = [#tpu.dimension_semantics<parallel>], iteration_bounds = array<i64: 1>, scalar_prefetch = 0 : i64, scratch_operands = 0 : i64, tpu.core_type = #tpu.core_type<tc>, window_params = [{transform_indices = @transform_0, window_bounds = array<i64: 16, 8>}, {pipeline_mode = #tpu.pipeline_mode<synchronous>, transform_indices = @transform_1, window_bounds = array<i64: 64, 16>}, {pipeline_mode = #tpu.pipeline_mode<synchronous>, transform_indices = @transform_2, window_bounds = array<i64: 64, 1>}, {pipeline_mode = #tpu.pipeline_mode<synchronous>, transform_indices = @transform_3, window_bounds = array<i64: 32, 64>}, {pipeline_mode = #tpu.pipeline_mode<synchronous>, transform_indices = @transform_4, window_bounds = array<i64: 32, 1>}, {pipeline_mode = #tpu.pipeline_mode<synchronous>, transform_indices = @transform_5, window_bounds = array<i64: 32, 1>}, {pipeline_mode = #tpu.pipeline_mode<synchronous>, transform_indices = @transform_6, window_bounds = array<i64: 1, 1>}, {transform_indices = @transform_7, window_bounds = array<i64: 1, 8>}]} {
    %c0 = arith.constant 0 : index
    %c0_0 = arith.constant 0 : index
    %0 = vector.load %arg2[%c0, %c0_0] : memref<64x16xbf16, #tpu.memory_space<vmem>>, vector<64x16xbf16>
    %c0_1 = arith.constant 0 : index
    %c0_2 = arith.constant 0 : index
    %1 = vector.load %arg1[%c0_1, %c0_2] : memref<16x8xbf16, #tpu.memory_space<vmem>>, vector<16x8xbf16>
    %cst = arith.constant dense<0.000000e+00> : vector<64x8xf32>
    %2 = tpu.matmul %0, %1, %cst {dimension_numbers = #tpu.dot_dimension_numbers<[1], [0], [0], [1], [0, 0, 1, 1], [], []>} : vector<64x16xbf16>, vector<16x8xbf16>, vector<64x8xf32> -> vector<64x8xf32>
    %c0_3 = arith.constant 0 : index
    %c0_4 = arith.constant 0 : index
    %3 = vector.load %arg3[%c0_3, %c0_4] : memref<64x1xf32, #tpu.memory_space<vmem>>, vector<64x1xf32>
    %4 = vector.broadcast %3 : vector<64x1xf32> to vector<64x8xf32>
    %5 = arith.addf %2, %4 : vector<64x8xf32>
    %cst_5 = arith.constant 0.000000e+00 : f32
    %6 = vector.broadcast %cst_5 : f32 to vector<64x8xf32>
    %7 = arith.maximumf %5, %6 : vector<64x8xf32>
    %c0_6 = arith.constant 0 : index
    %c0_7 = arith.constant 0 : index
    %8 = vector.load %arg4[%c0_6, %c0_7] : memref<32x64xbf16, #tpu.memory_space<vmem>>, vector<32x64xbf16>
    %9 = arith.truncf %7 : vector<64x8xf32> to vector<64x8xbf16>
    %cst_8 = arith.constant dense<0.000000e+00> : vector<32x8xf32>
    %10 = tpu.matmul %8, %9, %cst_8 {dimension_numbers = #tpu.dot_dimension_numbers<[1], [0], [0], [1], [0, 0, 1, 1], [], []>} : vector<32x64xbf16>, vector<64x8xbf16>, vector<32x8xf32> -> vector<32x8xf32>
    %c0_9 = arith.constant 0 : index
    %c0_10 = arith.constant 0 : index
    %11 = vector.load %arg5[%c0_9, %c0_10] : memref<32x1xf32, #tpu.memory_space<vmem>>, vector<32x1xf32>
    %12 = vector.broadcast %11 : vector<32x1xf32> to vector<32x8xf32>
    %13 = arith.addf %10, %12 : vector<32x8xf32>
    %cst_11 = arith.constant 0.000000e+00 : f32
    %14 = vector.broadcast %cst_11 : f32 to vector<32x8xf32>
    %15 = arith.maximumf %13, %14 : vector<32x8xf32>
    %c0_12 = arith.constant 0 : index
    %c0_13 = arith.constant 0 : index
    %16 = vector.load %arg6[%c0_12, %c0_13] : memref<32x1xf32, #tpu.memory_space<vmem>>, vector<32x1xf32>
    %17 = vector.broadcast %16 : vector<32x1xf32> to vector<32x8xf32>
    %18 = arith.mulf %15, %17 : vector<32x8xf32>
    %cst_14 = arith.constant dense<0.000000e+00> : vector<8xf32>
    %19 = vector.multi_reduction <add>, %18, %cst_14 [0] : vector<32x8xf32> to vector<8xf32>
    %20 = vector.shape_cast %19 : vector<8xf32> to vector<1x8xf32>
    %c0_15 = arith.constant 0 : index
    %c0_16 = arith.constant 0 : index
    %21 = vector.load %arg7[%c0_15, %c0_16] : memref<1x1xf32, #tpu.memory_space<vmem>>, vector<1x1xf32>
    %22 = vector.broadcast %21 : vector<1x1xf32> to vector<1x8xf32>
    %23 = arith.addf %20, %22 : vector<1x8xf32>
    %c0_17 = arith.constant 0 : index
    %c0_18 = arith.constant 0 : index
    %24 = vector.load %arg8[%c0_17, %c0_18] : memref<1x8xf32, #tpu.memory_space<vmem>>, vector<1x8xf32>
    tpu.vector_store %arg8[%c0_17, %c0_18], %23 {strides = array<i32>} : memref<1x8xf32, #tpu.memory_space<vmem>>, vector<1x8xf32>,
    return
  }
  func.func @transform_0(%arg0: i32) -> (i32, i32) {
    %c0_i32 = arith.constant 0 : i32
    %c0_i32_0 = arith.constant 0 : i32
    return %c0_i32, %arg0 : i32, i32
  }
  func.func @transform_1(%arg0: i32) -> (i32, i32) {
    %c0_i32 = arith.constant 0 : i32
    %c0_i32_0 = arith.constant 0 : i32
    %c0_i32_1 = arith.constant 0 : i32
    return %c0_i32, %c0_i32_0 : i32, i32
  }
  func.func @transform_2(%arg0: i32) -> (i32, i32) {
    %c0_i32 = arith.constant 0 : i32
    %c0_i32_0 = arith.constant 0 : i32
    %c0_i32_1 = arith.constant 0 : i32
    return %c0_i32, %c0_i32_0 : i32, i32
  }
  func.func @transform_3(%arg0: i32) -> (i32, i32) {
    %c0_i32 = arith.constant 0 : i32
    %c0_i32_0 = arith.constant 0 : i32
    %c0_i32_1 = arith.constant 0 : i32
    return %c0_i32, %c0_i32_0 : i32, i32
  }
  func.func @transform_4(%arg0: i32) -> (i32, i32) {
    %c0_i32 = arith.constant 0 : i32
    %c0_i32_0 = arith.constant 0 : i32
    %c0_i32_1 = arith.constant 0 : i32
    return %c0_i32, %c0_i32_0 : i32, i32
  }
  func.func @transform_5(%arg0: i32) -> (i32, i32) {
    %c0_i32 = arith.constant 0 : i32
    %c0_i32_0 = arith.constant 0 : i32
    %c0_i32_1 = arith.constant 0 : i32
    return %c0_i32, %c0_i32_0 : i32, i32
  }
  func.func @transform_6(%arg0: i32) -> (i32, i32) {
    %c0_i32 = arith.constant 0 : i32
    %c0_i32_0 = arith.constant 0 : i32
    %c0_i32_1 = arith.constant 0 : i32
    return %c0_i32, %c0_i32_0 : i32, i32
  }
  func.func @transform_7(%arg0: i32) -> (i32, i32) {
    %c0_i32 = arith.constant 0 : i32
    %c0_i32_0 = arith.constant 0 : i32
    return %c0_i32, %arg0 : i32, i32
  }
}

</mosaic_0001>

<bundles_post_ra>
// kernel: tpu_custom_call.1
= control target key start
LH: loop header
LB: loop body
LE: loop exit
PB: predicated region body
PF: predicated region fallthrough
CT: control target
= control target key end

     0   :  { %s502_s0 = inlined_call_operand.vmem [shape: bf16[16,8], index: 0, kind: input, shape index: {}]   ;;  %s503_s1 = inlined_call_operand.vmem [shape: bf16[64,16], index: 1, kind: input, shape index: {}]   ;;  %s504_s2 = inlined_call_operand.vmem [shape: f32[64,1], index: 2, kind: input, shape index: {}]   ;;  %s505_s3 = inlined_call_operand.vmem [shape: bf16[32,64], index: 3, kind: input, shape index: {}]   ;;  %s506_s4 = inlined_call_operand.vmem [shape: f32[32,1], index: 4, kind: input, shape index: {}]   ;;  %s507_s5 = inlined_call_operand.vmem [shape: f32[32,1], index: 5, kind: input, shape index: {}]   ;;  %s508_s6 = inlined_call_operand.<no memory space> [shape: f32[1,1], index: 6, kind: input, shape index: {}]   ;;  %s509_s7 = inlined_call_operand.hbm [shape: f32[1,8], index: 7, kind: output, shape index: {}]  }
   0x1   :  { %v12_v0 = vstv %s508_s6 }
   0x2   :  { %13 = vst [vmem:[#allocation2] sm:$0x1] %v12_v0 }
   0x3   :  { %v46_v1 = vld [vmem:[%s504_s2 + $0x30] sm:$0xff]  ;;  %v44_v2 = vld [vmem:[%s504_s2 + $0x20] sm:$0xff]  ;;  %v381_v4 = vmov 0   ;;  %vm114_vm0 = vcmask 130048  }
   0x4   :  { %v342_v3 = vld [vmem:[%s502_s0] sm:$0xff]  ;;  %352 = vset.pattern.permute.xlu0 %v381_v4  ;;  %353 = vset.pattern.permute.xlu1 %v381_v4  ;;  %v340_v5 = vld [vmem:[%s503_s1 + $0x10] sm:$0xff] }
   0x5   :  { %80 = vperm.xlu0 %352, %v46_v1   ;;  %70 = vperm.xlu1 %353, %v44_v2   ;;  %v338_v6 = vld [vmem:[%s503_s1] sm:$0xff]  ;;  %v42_v7 = vld [vmem:[%s504_s2 + $0x10] sm:$0xff] }
   0x6   :  { %345 = vmatpush.bf16.msra.mxu2 %v342_v3  ;;  %134 = vmatpush.bf16.msra.mxu0 %v342_v3 }
   0x7   :  { %354 = vset.pattern.permute.xlu2 %v381_v4 }
   0x8   :  { %14 = vsyncpa [#allocation4], 0  ;;  %v47_v8 = vld [vmem:[%s504_s2 + $0x38] sm:$0xff]  ;;  %v45_v9 = vld [vmem:[%s504_s2 + $0x28] sm:$0xff]  ;;  %60 = vperm.xlu2 %354, %v42_v7   ;;  %vm206_vm1 = vcmask 523264   ;;  %vm264_vm2 = vcmask 64512  }
   0x9   :  { %326 = vmatmul.msk.bf16.vlgmr.msra.gmra.mxu2 %vm114_vm0, %v340_v5  ;;  %324 = vmatmul.msk.bf16.vlgmr.msra.gmra.mxu0 %vm114_vm0, %v338_v6  ;;  %v43_v10 = vld [vmem:[%s504_s2 + $0x18] sm:$0xff]  ;;  %v40_v11 = vld [vmem:[%s504_s2] sm:$0xff]  ;;  %v41_v12 = vld [vmem:[%s504_s2 + $0x8] sm:$0xff]  ;;  %s295_s21 = sshll.u32 %s509_s7, 4  ;;  %vm286_vm3 = vcmask 57344   ;;  %s296_s21 = int_to_ptr.hbm [resolvable:$true] %s295_s21 }
   0xa   :  { %v341_v13 = vld [vmem:[%s503_s1 + $0x18] sm:$0xff]  ;;  %v339_v14 = vld [vmem:[%s503_s1 + $0x8] sm:$0xff]  ;;  %v172_v15 = vld [vmem:[%s506_s4] sm:$0xff] }
   0xb   :  { %v173_v16 = vld [vmem:[%s506_s4 + $0x8] sm:$0xff]  ;;  %v174_v17 = vld [vmem:[%s506_s4 + $0x10] sm:$0xff]  ;;  %v175_v18 = vld [vmem:[%s506_s4 + $0x18] sm:$0xff] }
   0xc   :  { %v236_v19 = vld [vmem:[%s507_s5] sm:$0xff]  ;;  %v237_v20 = vld [vmem:[%s507_s5 + $0x8] sm:$0xff]  ;;  %v238_v21 = vld [vmem:[%s507_s5 + $0x10] sm:$0xff] }
   0xd   :  { %85 = vperm.xlu0 %352, %v47_v8   ;;  %75 = vperm.xlu1 %353, %v45_v9   ;;  %v239_v22 = vld [vmem:[%s507_s5 + $0x18] sm:$0xff]  ;;  %v278_v23 = vld [vmem:[#allocation2] sm:$0x1]  ;;  %v344_v61 = vld [vmem:[%s505_s3 + $0x8] sm:$0xff] }
   0xe   :  { %v343_v60 = vld [vmem:[%s505_s3] sm:$0xff]  ;;  %s382_s3 = smov [#allocation3]  }
   0xf   :  { %s293_s18 = sshll.u32 %s382_s3, 4  ;;  %s294_s18 = int_to_ptr.vmem [resolvable:$true] %s293_s18 }
  0x10   :  { %65 = vperm.xlu2 %354, %v43_v10  }
  0x15   :  { %50 = vperm.xlu0 %352, %v40_v11   ;;  %55 = vperm.xlu1 %353, %v41_v12  }
  0x18   :  { %178 = vperm.xlu2 %354, %v172_v15  }
  0x19   :  { %327 = vmatmul.msk.bf16.gmra.mxu2 %vm114_vm0, %v341_v13  ;;  %325 = vmatmul.msk.bf16.gmra.mxu0 %vm114_vm0, %v339_v14 }
  0x1d   :  { %183 = vperm.xlu0 %352, %v173_v16   ;;  %188 = vperm.xlu1 %353, %v174_v17  }
  0x20   :  { %193 = vperm.xlu2 %354, %v175_v18  }
  0x25   :  { %242 = vperm.xlu0 %352, %v236_v19   ;;  %247 = vperm.xlu1 %353, %v237_v20  }
  0x28   :  { %252 = vperm.xlu2 %354, %v238_v21  }
  0x2d   :  { %257 = vperm.xlu0 %352, %v239_v22   ;;  %281 = vperm.xlu1 %353, %v278_v23  }
  0x62   :  { %v61_v32 = vpop.permute.xlu2 %60 }
  0x6a   :  { %v66_v43 = vpop.permute.xlu2 %65 }
  0x72   :  { %v179_v62 = vpop.permute.xlu2 %178 }
  0x77   :  { %v81_v28 = vpop.permute.xlu0 %80  ;;  %v71_v29 = vpop.permute.xlu1 %70 }
  0x7a   :  { %v194_v3 = vpop.permute.xlu2 %193 }
  0x7f   :  { %v86_v33 = vpop.permute.xlu0 %85  ;;  %v76_v34 = vpop.permute.xlu1 %75 }
  0x82   :  { %v253_v15 = vpop.permute.xlu2 %252 }
  0x86   :  { %v136_v24 = vpop.f32.mrf.mxu0 }
  0x87   :  { %v51_v48 = vpop.permute.xlu0 %50  ;;  %v56_v50 = vpop.permute.xlu1 %55 }
  0x88   :  { %v137_v51 = vadd.f32 %v136_v24, %v51_v48 }
  0x8a   :  { %v156_v56 = vmax.f32 %v137_v51, 0.0 }
  0x8c   :  { %v146_v25 = vpop.f32.mrf.mxu2 }
  0x8d   :  { %v147_v40 = vadd.f32 %v146_v25, %v71_v29 }
  0x8e   :  { %v138_v26 = vpop.f32.mrf.mxu0 }
  0x8f   :  { %v160_v49 = vmax.f32 %v147_v40, 0.0  ;;  %v139_v52 = vadd.f32 %v138_v26, %v56_v50  ;;  %v184_v63 = vpop.permute.xlu0 %183  ;;  %v189_v1 = vpop.permute.xlu1 %188 }
  0x91   :  { %v157_v57 = vmax.f32 %v139_v52, 0.0 }
  0x93   :  { %v168_v59 = vpack.c.bf16 %v157_v57, %v156_v56 }
  0x94   :  { %v148_v27 = vpop.f32.mrf.mxu2 }
  0x95   :  { %v149_v37 = vadd.f32 %v148_v27, %v76_v34 }
  0x96   :  { %v141_v30 = vpop.f32.mrf.mxu0 }
  0x97   :  { %v161_v44 = vmax.f32 %v149_v37, 0.0  ;;  %v142_v45 = vadd.f32 %v141_v30, %v61_v32  ;;  %v243_v7 = vpop.permute.xlu0 %242  ;;  %v248_v13 = vpop.permute.xlu1 %247 }
  0x99   :  { %v158_v53 = vmax.f32 %v142_v45, 0.0  ;;  %v170_v55 = vpack.c.bf16 %v161_v44, %v160_v49 }
  0x9c   :  { %v151_v31 = vpop.f32.mrf.mxu2 }
  0x9d   :  { %v152_v35 = vadd.f32 %v151_v31, %v81_v28 }
  0x9e   :  { %v143_v39 = vpop.f32.mrf.mxu0 }
  0x9f   :  { %v162_v41 = vmax.f32 %v152_v35, 0.0  ;;  %v144_v46 = vadd.f32 %v143_v39, %v66_v43  ;;  %v258_v23 = vpop.permute.xlu0 %257 }
  0xa1   :  { %v159_v54 = vmax.f32 %v144_v46, 0.0 }
  0xa3   :  { %v169_v58 = vpack.c.bf16 %v159_v54, %v158_v53 }
  0xa4   :  { %v153_v36 = vpop.f32.mrf.mxu2 }
  0xa5   :  { %v154_v38 = vadd.f32 %v153_v36, %v86_v33  ;;  %v282_v33 = vpop.permute.xlu1 %281 }
  0xa6   :  { %v284_v35 = vperm.slane %v282_v33, 0 }
  0xa7   :  { %v163_v42 = vmax.f32 %v154_v38, 0.0 }
  0xa9   :  { %v171_v47 = vpack.c.bf16 %v163_v42, %v162_v41 }
  0xab   :  { %217 = vmatpush.bf16.msra.mxu1 %v171_v47  ;;  %346 = vmatpush.bf16.msra.mxu3 %v171_v47 }
  0xaf   :  { %218 = vmatpush.bf16.msra.mxu1 %v170_v55  ;;  %347 = vmatpush.bf16.msra.mxu3 %v170_v55 }
  0xb3   :  { %219 = vmatpush.bf16.msra.mxu1 %v169_v58  ;;  %348 = vmatpush.bf16.msra.mxu3 %v169_v58 }
  0xb7   :  { %220 = vmatpush.bf16.msra.mxu1 %v168_v59  ;;  %349 = vmatpush.bf16.msra.mxu3 %v168_v59 }
  0xba   :  { %336 = vmatmul.msk.bf16.vlgmr.msra.gmra.mxu1 %vm206_vm1, %v343_v60  ;;  %337 = vmatmul.msk.bf16.vlgmr.msra.gmra.mxu3 %vm206_vm1, %v344_v61 }
 0x137   :  { %v222_v0 = vpop.f32.mrf.mxu1 }
 0x138   :  { %v223_v2 = vadd.f32 %v222_v0, %v179_v62 }
 0x13a   :  { %v232_v5 = vmax.f32 %v223_v2, 0.0 }
 0x13c   :  { %v260_v10 = vmul.f32 %v243_v7, %v232_v5 }
 0x13d   :  { %v227_v4 = vpop.f32.mrf.mxu3 }
 0x13e   :  { %v228_v6 = vadd.f32 %v227_v4, %v189_v1  ;;  %v265_v17 = vsel %vm264_vm2, %v260_v10, 0.0 }
 0x13f   :  { %v224_v8 = vpop.f32.mrf.mxu1 }
 0x140   :  { %v225_v9 = vadd.f32 %v224_v8, %v184_v63  ;;  %v234_v11 = vmax.f32 %v228_v6, 0.0 }
 0x142   :  { %v233_v12 = vmax.f32 %v225_v9, 0.0  ;;  %v262_v18 = vmul.f32 %v253_v15, %v234_v11 }
 0x144   :  { %v261_v14 = vmul.f32 %v248_v13, %v233_v12  ;;  %v268_v24 = vsel %vm264_vm2, %v262_v18, 0.0 }
 0x145   :  { %v229_v16 = vpop.f32.mrf.mxu3 }
 0x146   :  { %v266_v19 = vsel %vm264_vm2, %v261_v14, 0.0  ;;  %v230_v20 = vadd.f32 %v229_v16, %v194_v3 }
 0x147   :  { %v267_v21 = vadd.f32 %v266_v19, %v265_v17 }
 0x148   :  { %v235_v22 = vmax.f32 %v230_v20, 0.0 }
 0x149   :  { %v269_v26 = vadd.f32 %v268_v24, %v267_v21 }
 0x14a   :  { %v263_v25 = vmul.f32 %v258_v23, %v235_v22 }
 0x14c   :  { %v270_v27 = vsel %vm264_vm2, %v263_v25, 0.0 }
 0x14d   :  { %v271_v28 = vadd.f32 %v270_v27, %v269_v26 }
 0x14f   :  { %v272_v29 = vrot.slane %v271_v28, 4 }
 0x151   :  { %v273_v30 = vadd.f32 %v272_v29, %v271_v28 }
 0x153   :  { %v274_v31 = vrot.slane %v273_v30, 2 }
 0x155   :  { %v275_v32 = vadd.f32 %v274_v31, %v273_v30 }
 0x157   :  { %v276_v34 = vrot.slane %v275_v32, 1 }
 0x159   :  { %v277_v36 = vadd.f32 %v276_v34, %v275_v32 }
 0x15b   :  { %v285_v37 = vadd.f32 %v284_v35, %v277_v36 }
 0x15d   :  { %287 = vst.msk [vmem:[#allocation3] sm:$0x1] %vm286_vm3, %v285_v37 }
 0x15e   :  { %298 = dma.vmem_to_hbm [thread:$0]  %s294_s18, 16, %s296_s21, [#allocation4]  }
 0x15f   :  { %379 = dma.done.wait [#allocation4], 16  }
 0x160   :  { %380 = vsyncadd [#allocation4], 4294967280 }
 0x161   :  { %303 = vsyncpa [#allocation4], 1 }

</bundles_post_ra>
